<compile_context>
chip_gen: v7x
topology: tpu7x:2x2x1
jax: 0.10.0
libtpu: 0.0.40
codegen_flags: <defaults>
</compile_context>

<pallas_src>
import functools

import jax
import jax.numpy as jnp
from jax.experimental import pallas as pl
from jax.experimental.pallas import tpu as pltpu


def _adain_kernel(x_ref, wb_ref, o_ref, *, eps):
    # x_ref: (TILE_BC, HW)  wb_ref: (TILE_BC, 2) f32 [weight | bias]
    x = x_ref[...]

    # Per-row statistics with f32 accumulation. Two-pass (centered) variance
    # matches PyTorch batch_norm numerics and avoids E[x^2]-mean^2
    # cancellation when |mean| >> std.
    if x.dtype == jnp.float32:
        mean = jnp.mean(x, axis=1, keepdims=True)                    # (TBC,1)
        d = x - mean
        var = jnp.mean(d * d, axis=1, keepdims=True)
    else:
        mean = jnp.mean(x, axis=1, keepdims=True, dtype=jnp.float32)
        d = (x - mean.astype(x.dtype)).astype(jnp.float32)
        var = jnp.mean(d * d, axis=1, keepdims=True)

    inv_std = jax.lax.rsqrt(var + eps)                               # (TBC,1)
    w = wb_ref[:, 0:1]
    b = wb_ref[:, 1:2]

    # Fold the normalization into one per-row scale/shift -> one FMA per elem
    # on the big tile instead of sub + 2 muls + add.
    scale = inv_std * w
    shift = b - mean * scale

    if x.dtype == jnp.float32:
        y = x * scale + shift
    else:
        # Keep the big-tile FMA in the input dtype (bf16 VPU on v6e/v7x);
        # avoid keeping a full f32 copy of the tile live.
        y = x * scale.astype(x.dtype) + shift.astype(x.dtype)
    o_ref[...] = y.astype(o_ref.dtype)


def _pick_tile_bc(bc, hw, itemsize):
    """Largest row-tile that keeps the pipelined VMEM footprint modest."""
    sublane = {4: 8, 2: 16, 1: 32}.get(itemsize, 8)
    # ~2 MiB per x block => ~8 MiB live with double-buffered in + out blocks:
    # safe within v5e's 16 MiB default scoped VMEM and v7x's 64 MiB physical
    # VMEM, while large enough to run near the HBM roofline.
    budget_bytes = 2 * 1024 * 1024
    rows = budget_bytes // max(1, hw * itemsize)
    rows = max(sublane, (rows // sublane) * sublane)
    bc_rounded = ((bc + sublane - 1) // sublane) * sublane
    return min(rows, bc_rounded)


def adaptive_instance_norm_2d(x, weight, bias, eps=1e-5):
    """x: (B, C, H, W); weight, bias: (B*C,). Returns (B, C, H, W)."""
    B, C, H, W = x.shape
    BC, HW = B * C, H * W
    assert weight.shape == (BC,) and bias.shape == (BC,)

    itemsize = jnp.dtype(x.dtype).itemsize
    x2d = x.reshape(BC, HW)
    # Merge weight/bias into one (BC, 2) f32 array: one small DMA per grid
    # step instead of two lane-padded (tile, 1) blocks.
    wb = jnp.stack(
        [weight.astype(jnp.float32), bias.astype(jnp.float32)], axis=1)

    tile_bc = _pick_tile_bc(BC, HW, itemsize)
    bc_pad = pl.cdiv(BC, tile_bc) * tile_bc
    if bc_pad != BC:
        # Pad remainder rows so the grid covers BC exactly; padded rows are
        # normalized harmlessly (var=0 -> finite rsqrt(eps)) and sliced off.
        x2d = jnp.pad(x2d, ((0, bc_pad - BC), (0, 0)))
        wb = jnp.pad(wb, ((0, bc_pad - BC), (0, 0)))
    grid = (bc_pad // tile_bc,)

    # TODO(synk): for very large H*W where even an 8-row block exceeds the
    # VMEM budget, add a reduction grid axis over HW ("arbitrary", last) with
    # per-row sum / sum-of-squares accumulators in VMEM scratch.

    kernel = functools.partial(_adain_kernel, eps=float(eps))
    cost = pl.CostEstimate(
        flops=6 * BC * HW,
        transcendentals=BC,                     # rsqrt per instance row
        bytes_accessed=2 * BC * HW * itemsize + wb.size * 4,
    )

    out2d = pl.pallas_call(
        kernel,
        out_shape=jax.ShapeDtypeStruct((bc_pad, HW), x.dtype),
        grid_spec=pltpu.PrefetchScalarGridSpec(
            num_scalar_prefetch=0,
            grid=grid,
            in_specs=[
                pl.BlockSpec((tile_bc, HW), lambda i: (i, 0)),
                pl.BlockSpec((tile_bc, 2), lambda i: (i, 0)),
            ],
            out_specs=pl.BlockSpec((tile_bc, HW), lambda i: (i, 0)),
        ),
        compiler_params=pltpu.CompilerParams(
            dimension_semantics=("parallel",),
            vmem_limit_bytes=32 * 1024 * 1024,
        ),
        cost_estimate=cost,
    )(x2d, wb)

    return out2d[:BC].reshape(B, C, H, W)


if __name__ == "__main__":
    B, C, H, W = 2, 4, 16, 16
    eps = 1e-5

    key = jax.random.PRNGKey(0)
    kx, kw, kb = jax.random.split(key, 3)

    x = jax.random.normal(kx, (B, C, H, W), dtype=jnp.float32)
    # AdaIN weight/bias are assigned externally per (batch, channel) instance.
    weight = 1.0 + 0.1 * jax.random.normal(kw, (B * C,), dtype=jnp.float32)
    bias = 0.1 * jax.random.normal(kb, (B * C,), dtype=jnp.float32)

    out = adaptive_instance_norm_2d(x, weight, bias, eps=eps)
    out = jax.block_until_ready(out)

    # Pure-JAX reference (per-instance norm over spatial dims, biased var).
    xf = x.reshape(B * C, H * W)
    mean = xf.mean(axis=1, keepdims=True)
    var = ((xf - mean) ** 2).mean(axis=1, keepdims=True)
    ref = (xf - mean) / jnp.sqrt(var + eps) * weight[:, None] + bias[:, None]
    ref = ref.reshape(B, C, H, W)
    assert jnp.allclose(out, ref, atol=1e-4, rtol=1e-4), "mismatch vs reference"

    print("KERNEL_OK")
</pallas_src>

<mosaic_0001>
module attributes {stable_mosaic.version = 11 : i64} {
  func.func @_adain_kernel(%arg0: i32, %arg1: memref<8x256xf32, #tpu.memory_space<vmem>>, %arg2: memref<8x2xf32, #tpu.memory_space<vmem>>, %arg3: memref<8x256xf32, #tpu.memory_space<vmem>>) attributes {dimension_semantics = [#tpu.dimension_semantics<parallel>], iteration_bounds = array<i64: 1>, scalar_prefetch = 0 : i64, scratch_operands = 0 : i64, tpu.core_type = #tpu.core_type<tc>, window_params = [{transform_indices = @transform_0, window_bounds = array<i64: 8, 256>}, {transform_indices = @transform_1, window_bounds = array<i64: 8, 2>}, {transform_indices = @transform_2, window_bounds = array<i64: 8, 256>}]} {
    %c0 = arith.constant 0 : index
    %c0_0 = arith.constant 0 : index
    %0 = vector.load %arg1[%c0, %c0_0] : memref<8x256xf32, #tpu.memory_space<vmem>>, vector<8x256xf32>
    %cst = arith.constant dense<0.000000e+00> : vector<8xf32>
    %1 = vector.multi_reduction <add>, %0, %cst [1] : vector<8x256xf32> to vector<8xf32>
    %2 = vector.shape_cast %1 : vector<8xf32> to vector<8x1xf32>
    %cst_1 = arith.constant 2.560000e+02 : f32
    %3 = vector.broadcast %cst_1 : f32 to vector<8x1xf32>
    %4 = arith.divf %2, %3 : vector<8x1xf32>
    %5 = vector.broadcast %4 : vector<8x1xf32> to vector<8x256xf32>
    %6 = arith.subf %0, %5 : vector<8x256xf32>
    %7 = arith.mulf %6, %6 : vector<8x256xf32>
    %cst_2 = arith.constant dense<0.000000e+00> : vector<8xf32>
    %8 = vector.multi_reduction <add>, %7, %cst_2 [1] : vector<8x256xf32> to vector<8xf32>
    %9 = vector.shape_cast %8 : vector<8xf32> to vector<8x1xf32>
    %cst_3 = arith.constant 2.560000e+02 : f32
    %10 = vector.broadcast %cst_3 : f32 to vector<8x1xf32>
    %11 = arith.divf %9, %10 : vector<8x1xf32>
    %cst_4 = arith.constant 9.99999974E-6 : f32
    %12 = vector.broadcast %cst_4 : f32 to vector<8x1xf32>
    %13 = arith.addf %11, %12 : vector<8x1xf32>
    %14 = math.rsqrt %13 : vector<8x1xf32>
    %c0_5 = arith.constant 0 : index
    %c0_6 = arith.constant 0 : index
    %15 = vector.load %arg2[%c0_5, %c0_6] : memref<8x2xf32, #tpu.memory_space<vmem>>, vector<8x1xf32>
    %c0_7 = arith.constant 0 : index
    %c1 = arith.constant 1 : index
    %16 = vector.load %arg2[%c0_7, %c1] : memref<8x2xf32, #tpu.memory_space<vmem>>, vector<8x1xf32>
    %17 = arith.mulf %14, %15 : vector<8x1xf32>
    %18 = arith.mulf %4, %17 : vector<8x1xf32>
    %19 = arith.subf %16, %18 : vector<8x1xf32>
    %20 = vector.broadcast %17 : vector<8x1xf32> to vector<8x256xf32>
    %21 = arith.mulf %0, %20 : vector<8x256xf32>
    %22 = vector.broadcast %19 : vector<8x1xf32> to vector<8x256xf32>
    %23 = arith.addf %21, %22 : vector<8x256xf32>
    %c0_8 = arith.constant 0 : index
    %c0_9 = arith.constant 0 : index
    %24 = vector.load %arg3[%c0_8, %c0_9] : memref<8x256xf32, #tpu.memory_space<vmem>>, vector<8x256xf32>
    tpu.vector_store %arg3[%c0_8, %c0_9], %23 {strides = array<i32>} : memref<8x256xf32, #tpu.memory_space<vmem>>, vector<8x256xf32>,
    return
  }
  func.func @transform_0(%arg0: i32) -> (i32, i32) {
    %c0_i32 = arith.constant 0 : i32
    %c0_i32_0 = arith.constant 0 : i32
    return %arg0, %c0_i32 : i32, i32
  }
  func.func @transform_1(%arg0: i32) -> (i32, i32) {
    %c0_i32 = arith.constant 0 : i32
    %c0_i32_0 = arith.constant 0 : i32
    return %arg0, %c0_i32 : i32, i32
  }
  func.func @transform_2(%arg0: i32) -> (i32, i32) {
    %c0_i32 = arith.constant 0 : i32
    %c0_i32_0 = arith.constant 0 : i32
    return %arg0, %c0_i32 : i32, i32
  }
}

</mosaic_0001>

<bundles_post_ra>
// kernel: tpu_custom_call.1
= control target key start
LH: loop header
LB: loop body
LE: loop exit
PB: predicated region body
PF: predicated region fallthrough
CT: control target
= control target key end

     0   :  { %7 = vsyncpa [#allocation3], 0  ;;  %s184_s0 = inlined_call_operand.hbm [shape: f32[8,256], index: 0, kind: input, shape index: {}]   ;;  %s185_s1 = inlined_call_operand.vmem [shape: f32[8,2], index: 1, kind: input, shape index: {}]   ;;  %s186_s2 = inlined_call_operand.hbm [shape: f32[8,256], index: 2, kind: output, shape index: {}]  }
   0x1   :  { %8 = vsyncpa [#allocation4], 0  ;;  %s137_s9 = smov [#allocation2]   ;;  %s89_s13 = scalar_lea.hbm %s184_s0, 256 }
   0x2   :  { %s15_s10 = sshll.u32 %s137_s9, 4  ;;  %p90_p0 = scmp.ne.s32.totalorder %s184_s0, %s89_s13  ;;  %s16_s10 = int_to_ptr.vmem [resolvable:$true] %s15_s10 }
   0x3   :  { %p93_p1 = scmp.lt.u32.totalorder %s89_s13, %s184_s0 }
   0x5   :  { %p95_p2 = pnand %p93_p1, %p90_p0 }
   0x7   :  { %98 = shalt.err (!%p95_p2)
}
   0x8   :  { %s99_s18 = scalar_lea.vmem %s16_s10, 256  ;;  %p104_p4 = scmp.lt.s32.totalorder %s16_s10, %s16_s10 }
   0x9   :  { %p100_p3 = scmp.ne.s32.totalorder %s16_s10, %s99_s18  ;;  %p105_p5 = scmp.lt.s32.totalorder %s99_s18, %s99_s18 }
   0xb   :  { %p106_p6 = por %p105_p5, %p104_p4 }
   0xd   :  { %p107_p7 = pnand %p106_p6, %p100_p3 }
   0xf   :  { %110 = shalt.err (!%p107_p7)
}
  0x10   :  { %18 = dma.hbm_to_vmem [thread:$0]  %s184_s0, 256, %s16_s10, [#allocation3]  }
  0x11   :  { %133 = dma.done.wait [#allocation3], 256  }
  0x12   :  { %134 = vsyncadd [#allocation3], 4294967040  ;;  %v24_v0 = vld [vmem:[#allocation2] sm:$0xff]  ;;  %v25_v1 = vld [vmem:[#allocation2 + $0x8] sm:$0xff]  ;;  %v138_v10 = vmov 0   ;;  %v139_v14 = vmov 1  }
  0x13   :  { %v26_v2 = vadd.f32 %v25_v1, %v24_v0  ;;  %85 = vset.pattern.permute.xlu1 %v138_v10  ;;  %86 = vset.pattern.permute.xlu0 %v139_v14  ;;  %v41_v15 = vld [vmem:[%s185_s1] sm:$0xff]  ;;  %s140_s22 = smov 1   ;;  %s141_s23 = smov [#allocation5]  }
  0x14   :  { %s71_s24 = sshll.u32 %s141_s23, 4  ;;  %s72_s24 = int_to_ptr.vmem [resolvable:$true] %s71_s24 }
  0x15   :  { %27 = vadd.xlane.f32.xlu0 %v26_v2  ;;  %s111_s1 = scalar_lea.vmem %s72_s24, 256  ;;  %p116_p9 = scmp.lt.s32.totalorder %s72_s24, %s72_s24 }
  0x16   :  { %p112_p8 = scmp.ne.s32.totalorder %s72_s24, %s111_s1  ;;  %p117_p10 = scmp.lt.s32.totalorder %s111_s1, %s111_s1 }
  0x18   :  { %p118_p11 = por %p117_p10, %p116_p9 }
  0x1a   :  { %p119_p12 = pnand %p118_p11, %p112_p8 }
  0xa2   :  { %v28_v3 = vpop.xlane.xlu0 %27 }
  0xa3   :  { %v30_v4 = vmul.f32 0.00390625, %v28_v3 }
  0xa5   :  { %v31_v5 = vsub.f32 %v24_v0, %v30_v4  ;;  %v32_v6 = vsub.f32 %v25_v1, %v30_v4 }
  0xa7   :  { %v33_v7 = vmul.f32 %v31_v5, %v31_v5  ;;  %v34_v8 = vmul.f32 %v32_v6, %v32_v6 }
  0xa9   :  { %v35_v9 = vadd.f32 %v34_v8, %v33_v7 }
  0xab   :  { %36 = vadd.xlane.f32.xlu0 %v35_v9 }
 0x138   :  { %v37_v11 = vpop.xlane.xlu0 %36 }
 0x139   :  { %v38_v12 = vmul.f32 0.00390625, %v37_v11 }
 0x13b   :  { %v39_v13 = vadd.f32 1e-05, %v38_v12 }
 0x13d   :  { %87 = vrsqrt.f32 %v39_v13 }
 0x147   :  { %v88_v16 = vpop.eup %87 }
 0x148   :  { %v42_v17 = vmul.f32 %v88_v16, %v41_v15 }
 0x14a   :  { %v43_v18 = vmul.f32 %v42_v17, %v30_v4 }
 0x14c   :  { %45 = vrot.lane.b32.xlu1 %v43_v18, %s140_s22 }
 0x150   :  { %51 = vperm.xlu1 %85, %v42_v17  }
 0x1be   :  { %v46_v19 = vpop.permute.xlu1 %45 }
 0x1bf   :  { %v48_v20 = vsub.f32 %v41_v15, %v46_v19 }
 0x1c1   :  { %58 = vperm.xlu0 %86, %v48_v20  }
 0x1cf   :  { %v52_v21 = vpop.permute.xlu1 %51 }
 0x1d0   :  { %v54_v22 = vmul.f32 %v52_v21, %v24_v0  ;;  %v55_v23 = vmul.f32 %v52_v21, %v25_v1 }
 0x240   :  { %v59_v24 = vpop.permute.xlu0 %58 }
 0x241   :  { %v61_v25 = vadd.f32 %v59_v24, %v54_v22  ;;  %v62_v26 = vadd.f32 %v59_v24, %v55_v23 }
 0x243   :  { %63 = vst [vmem:[#allocation5] sm:$0xff] %v61_v25  ;;  %64 = vst [vmem:[#allocation5 + $0x8] sm:$0xff] %v62_v26 }
 0x244   :  { %122 = shalt.err (!%p119_p12)
}
 0x245   :  { %s123_s27 = scalar_lea.hbm %s186_s2, 256 }
 0x246   :  { %p124_p13 = scmp.ne.s32.totalorder %s186_s2, %s123_s27  ;;  %p127_p0 = scmp.lt.u32.totalorder %s123_s27, %s186_s2 }
 0x248   :  { %p129_p1 = pnand %p127_p0, %p124_p13 }
 0x24a   :  { %132 = shalt.err (!%p129_p1)
}
 0x24b   :  { %74 = dma.vmem_to_hbm [thread:$0]  %s72_s24, 256, %s186_s2, [#allocation4]  }
 0x24c   :  { %135 = dma.done.wait [#allocation4], 256  }
 0x24d   :  { %136 = vsyncadd [#allocation4], 4294967040 }
 0x24e   :  { %78 = vsyncpa [#allocation3], 1 }
 0x24f   :  { %79 = vsyncpa [#allocation4], 1 }

</bundles_post_ra>
